<compile_context>
chip_gen: v7x
topology: tpu7x:2x2x1
jax: 0.10.0
libtpu: 0.0.40
codegen_flags: <defaults>
</compile_context>

<pallas_src>
import jax
import jax.numpy as jnp
from jax.experimental import pallas as pl
from jax.experimental.pallas import tpu as pltpu


def clip_embedding_kernel(tok_ref, emb_hbm, pos_ref, out_ref, sem):
    # tok_ref : (B, T) int32 in SMEM   -- scalar-prefetched token ids (full)
    # emb_hbm : (V, E) in HBM          -- untiled embedding table (row gather)
    # pos_ref : (T, E) in VMEM         -- position embedding (constant index)
    # out_ref : (TB, T, E) in VMEM     -- output block; rows DMA'd directly in
    # sem     : shared scalar DMA semaphore for all row gathers of this step
    TB, T, _ = out_ref.shape

    # Hoisted base batch-row offset for this grid step.
    base = pl.multiple_of(pl.program_id(0) * TB, TB)

    # Issue all TB*T row gathers.  Outer loop rolled (bounds program size),
    # inner loop over T fully unrolled straight-line (max issue rate, no
    # div/mod, static token offset).
    @pl.loop(0, TB)
    def _issue(i):
        b = base + i
        for t in range(T):  # static unroll
            row = tok_ref[b, t]
            pltpu.make_async_copy(
                emb_hbm.at[row], out_ref.at[i, t], sem
            ).start()

    # Single bulk wait: every gather signaled `sem`, and together the copies
    # cover exactly the bytes of the full output block, so one wait descriptor
    # sized to out_ref drains them all (only the dst shape matters here).
    pltpu.make_async_copy(out_ref, out_ref, sem).wait()

    # Fused epilogue: in-place position-embedding add on the gathered rows.
    out_ref[...] = (out_ref[...] + pos_ref[...][None, :, :]).astype(out_ref.dtype)


def clip_embedding(tokens, token_emb, pos_emb, *, batch_block=16):
    """tokens: (B, T) int ids, token_emb: (V, E), pos_emb: (T, E)."""
    B, T = tokens.shape
    V, E = token_emb.shape
    assert pos_emb.shape == (T, E)

    tokens = tokens.astype(jnp.int32)
    pos_emb = pos_emb.astype(token_emb.dtype)

    # Pick the largest batch block <= batch_block that divides B, while
    # keeping the grid extent >= 2 so both v7x TensorCores get work.
    tb = max(1, min(batch_block, B))
    if B >= 2:
        tb = max(1, min(tb, B // 2))
    while B % tb:
        tb -= 1
    grid = (B // tb,)

    itemsize = jnp.dtype(token_emb.dtype).itemsize
    out_block_bytes = tb * T * E * itemsize
    pos_block_bytes = T * E * itemsize
    # Double-buffered output block + double-buffered position block + slack.
    vmem_limit = int(
        min(max(2 * (out_block_bytes + pos_block_bytes) + (2 << 20), 8 << 20), 96 << 20)
    )

    return pl.pallas_call(
        clip_embedding_kernel,
        out_shape=jax.ShapeDtypeStruct((B, T, E), token_emb.dtype),
        grid_spec=pltpu.PrefetchScalarGridSpec(
            num_scalar_prefetch=1,  # tokens -> SMEM, drives DMA row addressing
            grid=grid,
            in_specs=[
                # Embedding table: leave in HBM, gather rows manually via DMA.
                pl.BlockSpec(memory_space=pl.ANY),
                # Position table: tiny, constant index -> fetched once.
                pl.BlockSpec((T, E), lambda bb, tok: (0, 0)),
            ],
            out_specs=pl.BlockSpec((tb, T, E), lambda bb, tok: (bb, 0, 0)),
            scratch_shapes=[
                pltpu.SemaphoreType.DMA,  # one shared sem per grid step
            ],
        ),
        compiler_params=pltpu.CompilerParams(
            dimension_semantics=("parallel",),
            vmem_limit_bytes=vmem_limit,
        ),
    )(tokens, token_emb, pos_emb)


if __name__ == "__main__":
    # Small shapes consistent with the module's forward.  E is a multiple of
    # 128 so the output stores are lane-dense (matching real CLIP E=768).
    vocab_size, embedding_size, num_tokens, batch = 512, 128, 16, 8

    key = jax.random.PRNGKey(0)
    k_tok, k_emb, k_pos = jax.random.split(key, 3)

    # nn.Embedding weights ~ N(0, 1).  The module initializes the position
    # embedding to zeros; use small random values here so the add path is
    # actually exercised by the correctness check (forward semantics are the
    # same regardless of parameter values).
    token_emb = jax.random.normal(k_emb, (vocab_size, embedding_size), jnp.float32)
    pos_emb = 0.01 * jax.random.normal(k_pos, (num_tokens, embedding_size), jnp.float32)

    tokens = jax.random.randint(k_tok, (batch, num_tokens), 0, vocab_size, jnp.int32)

    out = clip_embedding(tokens, token_emb, pos_emb, batch_block=16)
    out = jax.block_until_ready(out)

    # Reference (plain JAX): embedding lookup + position add.
    ref = token_emb[tokens] + pos_emb[None, :, :]
    assert out.shape == (batch, num_tokens, embedding_size)
    assert jnp.allclose(out, ref, atol=1e-5, rtol=1e-5)

    print("KERNEL_OK")
</pallas_src>

<mosaic_0001>
module attributes {stable_mosaic.version = 11 : i64} {
  func.func @clip_embedding_kernel(%arg0: i32, %arg1: memref<8x16xi32, #tpu.memory_space<smem>>, %arg2: memref<512x128xf32, #tpu.memory_space<any>>, %arg3: memref<16x128xf32, #tpu.memory_space<vmem>>, %arg4: memref<4x16x128xf32, #tpu.memory_space<vmem>>, %arg5: memref<!tpu.dma_semaphore, #tpu.memory_space<semaphore_mem>>) attributes {dimension_semantics = [#tpu.dimension_semantics<parallel>], iteration_bounds = array<i64: 2>, scalar_prefetch = 1 : i64, scratch_operands = 1 : i64, tpu.core_type = #tpu.core_type<tc>, window_params = [{}, {pipeline_mode = #tpu.pipeline_mode<synchronous>, transform_indices = @transform_1, window_bounds = array<i64: 16, 128>}, {transform_indices = @transform_2, window_bounds = array<i64: 4, 16, 128>}]} {
    %c4_i32 = arith.constant 4 : i32
    %0 = arith.muli %arg0, %c4_i32 : i32
    %1 = tpu.assume_multiple %0, 4 : i32
    %c0_i32 = arith.constant 0 : i32
    %c4_i32_0 = arith.constant 4 : i32
    %2 = arith.addi %c0_i32, %c4_i32_0 : i32
    %c1_i32 = arith.constant 1 : i32
    scf.for %arg6 = %c0_i32 to %2 step %c1_i32  : i32 {
      %c1_i32_9 = arith.constant 1 : i32
      %9 = arith.muli %arg6, %c1_i32_9 : i32
      %c0_i32_10 = arith.constant 0 : i32
      %10 = arith.addi %c0_i32_10, %9 : i32
      %11 = arith.addi %1, %10 : i32
      %12 = arith.index_cast %11 : i32 to index
      %c0_11 = arith.constant 0 : index
      %13 = memref.load %arg1[%12, %c0_11] : memref<8x16xi32, #tpu.memory_space<smem>>
      %c0_i32_12 = arith.constant 0 : i32
      %c0_i32_13 = arith.constant 0 : i32
      %14 = tpu.memref_slice %arg2[%13, %c0_i32_13] : memref<512x128xf32, #tpu.memory_space<any>> -> memref<1x128xf32, #tpu.memory_space<any>>
      %15 = tpu.memref_squeeze %14 : memref<1x128xf32, #tpu.memory_space<any>> -> memref<128xf32, #tpu.memory_space<any>>
      %c0_i32_14 = arith.constant 0 : i32
      %16 = tpu.memref_slice %arg4[%10, %c0_i32_12, %c0_i32_14] : memref<4x16x128xf32, #tpu.memory_space<vmem>> -> memref<1x1x128xf32, #tpu.memory_space<vmem>>
      %17 = tpu.memref_squeeze %16 : memref<1x1x128xf32, #tpu.memory_space<vmem>> -> memref<128xf32, #tpu.memory_space<vmem>>
      tpu.enqueue_dma source(%15 : memref<128xf32, #tpu.memory_space<any>>) target(%17 : memref<128xf32, #tpu.memory_space<vmem>>) target_semaphore(%arg5 : memref<!tpu.dma_semaphore, #tpu.memory_space<semaphore_mem>>)
      %18 = arith.index_cast %11 : i32 to index
      %c1 = arith.constant 1 : index
      %19 = memref.load %arg1[%18, %c1] : memref<8x16xi32, #tpu.memory_space<smem>>
      %c1_i32_15 = arith.constant 1 : i32
      %c0_i32_16 = arith.constant 0 : i32
      %20 = tpu.memref_slice %arg2[%19, %c0_i32_16] : memref<512x128xf32, #tpu.memory_space<any>> -> memref<1x128xf32, #tpu.memory_space<any>>
      %21 = tpu.memref_squeeze %20 : memref<1x128xf32, #tpu.memory_space<any>> -> memref<128xf32, #tpu.memory_space<any>>
      %c0_i32_17 = arith.constant 0 : i32
      %22 = tpu.memref_slice %arg4[%10, %c1_i32_15, %c0_i32_17] : memref<4x16x128xf32, #tpu.memory_space<vmem>> -> memref<1x1x128xf32, #tpu.memory_space<vmem>>
      %23 = tpu.memref_squeeze %22 : memref<1x1x128xf32, #tpu.memory_space<vmem>> -> memref<128xf32, #tpu.memory_space<vmem>>
      tpu.enqueue_dma source(%21 : memref<128xf32, #tpu.memory_space<any>>) target(%23 : memref<128xf32, #tpu.memory_space<vmem>>) target_semaphore(%arg5 : memref<!tpu.dma_semaphore, #tpu.memory_space<semaphore_mem>>)
      %24 = arith.index_cast %11 : i32 to index
      %c2 = arith.constant 2 : index
      %25 = memref.load %arg1[%24, %c2] : memref<8x16xi32, #tpu.memory_space<smem>>
      %c2_i32 = arith.constant 2 : i32
      %c0_i32_18 = arith.constant 0 : i32
      %26 = tpu.memref_slice %arg2[%25, %c0_i32_18] : memref<512x128xf32, #tpu.memory_space<any>> -> memref<1x128xf32, #tpu.memory_space<any>>
      %27 = tpu.memref_squeeze %26 : memref<1x128xf32, #tpu.memory_space<any>> -> memref<128xf32, #tpu.memory_space<any>>
      %c0_i32_19 = arith.constant 0 : i32
      %28 = tpu.memref_slice %arg4[%10, %c2_i32, %c0_i32_19] : memref<4x16x128xf32, #tpu.memory_space<vmem>> -> memref<1x1x128xf32, #tpu.memory_space<vmem>>
      %29 = tpu.memref_squeeze %28 : memref<1x1x128xf32, #tpu.memory_space<vmem>> -> memref<128xf32, #tpu.memory_space<vmem>>
      tpu.enqueue_dma source(%27 : memref<128xf32, #tpu.memory_space<any>>) target(%29 : memref<128xf32, #tpu.memory_space<vmem>>) target_semaphore(%arg5 : memref<!tpu.dma_semaphore, #tpu.memory_space<semaphore_mem>>)
      %30 = arith.index_cast %11 : i32 to index
      %c3 = arith.constant 3 : index
      %31 = memref.load %arg1[%30, %c3] : memref<8x16xi32, #tpu.memory_space<smem>>
      %c3_i32 = arith.constant 3 : i32
      %c0_i32_20 = arith.constant 0 : i32
      %32 = tpu.memref_slice %arg2[%31, %c0_i32_20] : memref<512x128xf32, #tpu.memory_space<any>> -> memref<1x128xf32, #tpu.memory_space<any>>
      %33 = tpu.memref_squeeze %32 : memref<1x128xf32, #tpu.memory_space<any>> -> memref<128xf32, #tpu.memory_space<any>>
      %c0_i32_21 = arith.constant 0 : i32
      %34 = tpu.memref_slice %arg4[%10, %c3_i32, %c0_i32_21] : memref<4x16x128xf32, #tpu.memory_space<vmem>> -> memref<1x1x128xf32, #tpu.memory_space<vmem>>
      %35 = tpu.memref_squeeze %34 : memref<1x1x128xf32, #tpu.memory_space<vmem>> -> memref<128xf32, #tpu.memory_space<vmem>>
      tpu.enqueue_dma source(%33 : memref<128xf32, #tpu.memory_space<any>>) target(%35 : memref<128xf32, #tpu.memory_space<vmem>>) target_semaphore(%arg5 : memref<!tpu.dma_semaphore, #tpu.memory_space<semaphore_mem>>)
      %36 = arith.index_cast %11 : i32 to index
      %c4 = arith.constant 4 : index
      %37 = memref.load %arg1[%36, %c4] : memref<8x16xi32, #tpu.memory_space<smem>>
      %c4_i32_22 = arith.constant 4 : i32
      %c0_i32_23 = arith.constant 0 : i32
      %38 = tpu.memref_slice %arg2[%37, %c0_i32_23] : memref<512x128xf32, #tpu.memory_space<any>> -> memref<1x128xf32, #tpu.memory_space<any>>
      %39 = tpu.memref_squeeze %38 : memref<1x128xf32, #tpu.memory_space<any>> -> memref<128xf32, #tpu.memory_space<any>>
      %c0_i32_24 = arith.constant 0 : i32
      %40 = tpu.memref_slice %arg4[%10, %c4_i32_22, %c0_i32_24] : memref<4x16x128xf32, #tpu.memory_space<vmem>> -> memref<1x1x128xf32, #tpu.memory_space<vmem>>
      %41 = tpu.memref_squeeze %40 : memref<1x1x128xf32, #tpu.memory_space<vmem>> -> memref<128xf32, #tpu.memory_space<vmem>>
      tpu.enqueue_dma source(%39 : memref<128xf32, #tpu.memory_space<any>>) target(%41 : memref<128xf32, #tpu.memory_space<vmem>>) target_semaphore(%arg5 : memref<!tpu.dma_semaphore, #tpu.memory_space<semaphore_mem>>)
      %42 = arith.index_cast %11 : i32 to index
      %c5 = arith.constant 5 : index
      %43 = memref.load %arg1[%42, %c5] : memref<8x16xi32, #tpu.memory_space<smem>>
      %c5_i32 = arith.constant 5 : i32
      %c0_i32_25 = arith.constant 0 : i32
      %44 = tpu.memref_slice %arg2[%43, %c0_i32_25] : memref<512x128xf32, #tpu.memory_space<any>> -> memref<1x128xf32, #tpu.memory_space<any>>
      %45 = tpu.memref_squeeze %44 : memref<1x128xf32, #tpu.memory_space<any>> -> memref<128xf32, #tpu.memory_space<any>>
      %c0_i32_26 = arith.constant 0 : i32
      %46 = tpu.memref_slice %arg4[%10, %c5_i32, %c0_i32_26] : memref<4x16x128xf32, #tpu.memory_space<vmem>> -> memref<1x1x128xf32, #tpu.memory_space<vmem>>
      %47 = tpu.memref_squeeze %46 : memref<1x1x128xf32, #tpu.memory_space<vmem>> -> memref<128xf32, #tpu.memory_space<vmem>>
      tpu.enqueue_dma source(%45 : memref<128xf32, #tpu.memory_space<any>>) target(%47 : memref<128xf32, #tpu.memory_space<vmem>>) target_semaphore(%arg5 : memref<!tpu.dma_semaphore, #tpu.memory_space<semaphore_mem>>)
      %48 = arith.index_cast %11 : i32 to index
      %c6 = arith.constant 6 : index
      %49 = memref.load %arg1[%48, %c6] : memref<8x16xi32, #tpu.memory_space<smem>>
      %c6_i32 = arith.constant 6 : i32
      %c0_i32_27 = arith.constant 0 : i32
      %50 = tpu.memref_slice %arg2[%49, %c0_i32_27] : memref<512x128xf32, #tpu.memory_space<any>> -> memref<1x128xf32, #tpu.memory_space<any>>
      %51 = tpu.memref_squeeze %50 : memref<1x128xf32, #tpu.memory_space<any>> -> memref<128xf32, #tpu.memory_space<any>>
      %c0_i32_28 = arith.constant 0 : i32
      %52 = tpu.memref_slice %arg4[%10, %c6_i32, %c0_i32_28] : memref<4x16x128xf32, #tpu.memory_space<vmem>> -> memref<1x1x128xf32, #tpu.memory_space<vmem>>
      %53 = tpu.memref_squeeze %52 : memref<1x1x128xf32, #tpu.memory_space<vmem>> -> memref<128xf32, #tpu.memory_space<vmem>>
      tpu.enqueue_dma source(%51 : memref<128xf32, #tpu.memory_space<any>>) target(%53 : memref<128xf32, #tpu.memory_space<vmem>>) target_semaphore(%arg5 : memref<!tpu.dma_semaphore, #tpu.memory_space<semaphore_mem>>)
      %54 = arith.index_cast %11 : i32 to index
      %c7 = arith.constant 7 : index
      %55 = memref.load %arg1[%54, %c7] : memref<8x16xi32, #tpu.memory_space<smem>>
      %c7_i32 = arith.constant 7 : i32
      %c0_i32_29 = arith.constant 0 : i32
      %56 = tpu.memref_slice %arg2[%55, %c0_i32_29] : memref<512x128xf32, #tpu.memory_space<any>> -> memref<1x128xf32, #tpu.memory_space<any>>
      %57 = tpu.memref_squeeze %56 : memref<1x128xf32, #tpu.memory_space<any>> -> memref<128xf32, #tpu.memory_space<any>>
      %c0_i32_30 = arith.constant 0 : i32
      %58 = tpu.memref_slice %arg4[%10, %c7_i32, %c0_i32_30] : memref<4x16x128xf32, #tpu.memory_space<vmem>> -> memref<1x1x128xf32, #tpu.memory_space<vmem>>
      %59 = tpu.memref_squeeze %58 : memref<1x1x128xf32, #tpu.memory_space<vmem>> -> memref<128xf32, #tpu.memory_space<vmem>>
      tpu.enqueue_dma source(%57 : memref<128xf32, #tpu.memory_space<any>>) target(%59 : memref<128xf32, #tpu.memory_space<vmem>>) target_semaphore(%arg5 : memref<!tpu.dma_semaphore, #tpu.memory_space<semaphore_mem>>)
      %60 = arith.index_cast %11 : i32 to index
      %c8 = arith.constant 8 : index
      %61 = memref.load %arg1[%60, %c8] : memref<8x16xi32, #tpu.memory_space<smem>>
      %c8_i32 = arith.constant 8 : i32
      %c0_i32_31 = arith.constant 0 : i32
      %62 = tpu.memref_slice %arg2[%61, %c0_i32_31] : memref<512x128xf32, #tpu.memory_space<any>> -> memref<1x128xf32, #tpu.memory_space<any>>
      %63 = tpu.memref_squeeze %62 : memref<1x128xf32, #tpu.memory_space<any>> -> memref<128xf32, #tpu.memory_space<any>>
      %c0_i32_32 = arith.constant 0 : i32
      %64 = tpu.memref_slice %arg4[%10, %c8_i32, %c0_i32_32] : memref<4x16x128xf32, #tpu.memory_space<vmem>> -> memref<1x1x128xf32, #tpu.memory_space<vmem>>
      %65 = tpu.memref_squeeze %64 : memref<1x1x128xf32, #tpu.memory_space<vmem>> -> memref<128xf32, #tpu.memory_space<vmem>>
      tpu.enqueue_dma source(%63 : memref<128xf32, #tpu.memory_space<any>>) target(%65 : memref<128xf32, #tpu.memory_space<vmem>>) target_semaphore(%arg5 : memref<!tpu.dma_semaphore, #tpu.memory_space<semaphore_mem>>)
      %66 = arith.index_cast %11 : i32 to index
      %c9 = arith.constant 9 : index
      %67 = memref.load %arg1[%66, %c9] : memref<8x16xi32, #tpu.memory_space<smem>>
      %c9_i32 = arith.constant 9 : i32
      %c0_i32_33 = arith.constant 0 : i32
      %68 = tpu.memref_slice %arg2[%67, %c0_i32_33] : memref<512x128xf32, #tpu.memory_space<any>> -> memref<1x128xf32, #tpu.memory_space<any>>
      %69 = tpu.memref_squeeze %68 : memref<1x128xf32, #tpu.memory_space<any>> -> memref<128xf32, #tpu.memory_space<any>>
      %c0_i32_34 = arith.constant 0 : i32
      %70 = tpu.memref_slice %arg4[%10, %c9_i32, %c0_i32_34] : memref<4x16x128xf32, #tpu.memory_space<vmem>> -> memref<1x1x128xf32, #tpu.memory_space<vmem>>
      %71 = tpu.memref_squeeze %70 : memref<1x1x128xf32, #tpu.memory_space<vmem>> -> memref<128xf32, #tpu.memory_space<vmem>>
      tpu.enqueue_dma source(%69 : memref<128xf32, #tpu.memory_space<any>>) target(%71 : memref<128xf32, #tpu.memory_space<vmem>>) target_semaphore(%arg5 : memref<!tpu.dma_semaphore, #tpu.memory_space<semaphore_mem>>)
      %72 = arith.index_cast %11 : i32 to index
      %c10 = arith.constant 10 : index
      %73 = memref.load %arg1[%72, %c10] : memref<8x16xi32, #tpu.memory_space<smem>>
      %c10_i32 = arith.constant 10 : i32
      %c0_i32_35 = arith.constant 0 : i32
      %74 = tpu.memref_slice %arg2[%73, %c0_i32_35] : memref<512x128xf32, #tpu.memory_space<any>> -> memref<1x128xf32, #tpu.memory_space<any>>
      %75 = tpu.memref_squeeze %74 : memref<1x128xf32, #tpu.memory_space<any>> -> memref<128xf32, #tpu.memory_space<any>>
      %c0_i32_36 = arith.constant 0 : i32
      %76 = tpu.memref_slice %arg4[%10, %c10_i32, %c0_i32_36] : memref<4x16x128xf32, #tpu.memory_space<vmem>> -> memref<1x1x128xf32, #tpu.memory_space<vmem>>
      %77 = tpu.memref_squeeze %76 : memref<1x1x128xf32, #tpu.memory_space<vmem>> -> memref<128xf32, #tpu.memory_space<vmem>>
      tpu.enqueue_dma source(%75 : memref<128xf32, #tpu.memory_space<any>>) target(%77 : memref<128xf32, #tpu.memory_space<vmem>>) target_semaphore(%arg5 : memref<!tpu.dma_semaphore, #tpu.memory_space<semaphore_mem>>)
      %78 = arith.index_cast %11 : i32 to index
      %c11 = arith.constant 11 : index
      %79 = memref.load %arg1[%78, %c11] : memref<8x16xi32, #tpu.memory_space<smem>>
      %c11_i32 = arith.constant 11 : i32
      %c0_i32_37 = arith.constant 0 : i32
      %80 = tpu.memref_slice %arg2[%79, %c0_i32_37] : memref<512x128xf32, #tpu.memory_space<any>> -> memref<1x128xf32, #tpu.memory_space<any>>
      %81 = tpu.memref_squeeze %80 : memref<1x128xf32, #tpu.memory_space<any>> -> memref<128xf32, #tpu.memory_space<any>>
      %c0_i32_38 = arith.constant 0 : i32
      %82 = tpu.memref_slice %arg4[%10, %c11_i32, %c0_i32_38] : memref<4x16x128xf32, #tpu.memory_space<vmem>> -> memref<1x1x128xf32, #tpu.memory_space<vmem>>
      %83 = tpu.memref_squeeze %82 : memref<1x1x128xf32, #tpu.memory_space<vmem>> -> memref<128xf32, #tpu.memory_space<vmem>>
      tpu.enqueue_dma source(%81 : memref<128xf32, #tpu.memory_space<any>>) target(%83 : memref<128xf32, #tpu.memory_space<vmem>>) target_semaphore(%arg5 : memref<!tpu.dma_semaphore, #tpu.memory_space<semaphore_mem>>)
      %84 = arith.index_cast %11 : i32 to index
      %c12 = arith.constant 12 : index
      %85 = memref.load %arg1[%84, %c12] : memref<8x16xi32, #tpu.memory_space<smem>>
      %c12_i32 = arith.constant 12 : i32
      %c0_i32_39 = arith.constant 0 : i32
      %86 = tpu.memref_slice %arg2[%85, %c0_i32_39] : memref<512x128xf32, #tpu.memory_space<any>> -> memref<1x128xf32, #tpu.memory_space<any>>
      %87 = tpu.memref_squeeze %86 : memref<1x128xf32, #tpu.memory_space<any>> -> memref<128xf32, #tpu.memory_space<any>>
      %c0_i32_40 = arith.constant 0 : i32
      %88 = tpu.memref_slice %arg4[%10, %c12_i32, %c0_i32_40] : memref<4x16x128xf32, #tpu.memory_space<vmem>> -> memref<1x1x128xf32, #tpu.memory_space<vmem>>
      %89 = tpu.memref_squeeze %88 : memref<1x1x128xf32, #tpu.memory_space<vmem>> -> memref<128xf32, #tpu.memory_space<vmem>>
      tpu.enqueue_dma source(%87 : memref<128xf32, #tpu.memory_space<any>>) target(%89 : memref<128xf32, #tpu.memory_space<vmem>>) target_semaphore(%arg5 : memref<!tpu.dma_semaphore, #tpu.memory_space<semaphore_mem>>)
      %90 = arith.index_cast %11 : i32 to index
      %c13 = arith.constant 13 : index
      %91 = memref.load %arg1[%90, %c13] : memref<8x16xi32, #tpu.memory_space<smem>>
      %c13_i32 = arith.constant 13 : i32
      %c0_i32_41 = arith.constant 0 : i32
      %92 = tpu.memref_slice %arg2[%91, %c0_i32_41] : memref<512x128xf32, #tpu.memory_space<any>> -> memref<1x128xf32, #tpu.memory_space<any>>
      %93 = tpu.memref_squeeze %92 : memref<1x128xf32, #tpu.memory_space<any>> -> memref<128xf32, #tpu.memory_space<any>>
      %c0_i32_42 = arith.constant 0 : i32
      %94 = tpu.memref_slice %arg4[%10, %c13_i32, %c0_i32_42] : memref<4x16x128xf32, #tpu.memory_space<vmem>> -> memref<1x1x128xf32, #tpu.memory_space<vmem>>
      %95 = tpu.memref_squeeze %94 : memref<1x1x128xf32, #tpu.memory_space<vmem>> -> memref<128xf32, #tpu.memory_space<vmem>>
      tpu.enqueue_dma source(%93 : memref<128xf32, #tpu.memory_space<any>>) target(%95 : memref<128xf32, #tpu.memory_space<vmem>>) target_semaphore(%arg5 : memref<!tpu.dma_semaphore, #tpu.memory_space<semaphore_mem>>)
      %96 = arith.index_cast %11 : i32 to index
      %c14 = arith.constant 14 : index
      %97 = memref.load %arg1[%96, %c14] : memref<8x16xi32, #tpu.memory_space<smem>>
      %c14_i32 = arith.constant 14 : i32
      %c0_i32_43 = arith.constant 0 : i32
      %98 = tpu.memref_slice %arg2[%97, %c0_i32_43] : memref<512x128xf32, #tpu.memory_space<any>> -> memref<1x128xf32, #tpu.memory_space<any>>
      %99 = tpu.memref_squeeze %98 : memref<1x128xf32, #tpu.memory_space<any>> -> memref<128xf32, #tpu.memory_space<any>>
      %c0_i32_44 = arith.constant 0 : i32
      %100 = tpu.memref_slice %arg4[%10, %c14_i32, %c0_i32_44] : memref<4x16x128xf32, #tpu.memory_space<vmem>> -> memref<1x1x128xf32, #tpu.memory_space<vmem>>
      %101 = tpu.memref_squeeze %100 : memref<1x1x128xf32, #tpu.memory_space<vmem>> -> memref<128xf32, #tpu.memory_space<vmem>>
      tpu.enqueue_dma source(%99 : memref<128xf32, #tpu.memory_space<any>>) target(%101 : memref<128xf32, #tpu.memory_space<vmem>>) target_semaphore(%arg5 : memref<!tpu.dma_semaphore, #tpu.memory_space<semaphore_mem>>)
      %102 = arith.index_cast %11 : i32 to index
      %c15 = arith.constant 15 : index
      %103 = memref.load %arg1[%102, %c15] : memref<8x16xi32, #tpu.memory_space<smem>>
      %c15_i32 = arith.constant 15 : i32
      %c0_i32_45 = arith.constant 0 : i32
      %104 = tpu.memref_slice %arg2[%103, %c0_i32_45] : memref<512x128xf32, #tpu.memory_space<any>> -> memref<1x128xf32, #tpu.memory_space<any>>
      %105 = tpu.memref_squeeze %104 : memref<1x128xf32, #tpu.memory_space<any>> -> memref<128xf32, #tpu.memory_space<any>>
      %c0_i32_46 = arith.constant 0 : i32
      %106 = tpu.memref_slice %arg4[%10, %c15_i32, %c0_i32_46] : memref<4x16x128xf32, #tpu.memory_space<vmem>> -> memref<1x1x128xf32, #tpu.memory_space<vmem>>
      %107 = tpu.memref_squeeze %106 : memref<1x1x128xf32, #tpu.memory_space<vmem>> -> memref<128xf32, #tpu.memory_space<vmem>>
      tpu.enqueue_dma source(%105 : memref<128xf32, #tpu.memory_space<any>>) target(%107 : memref<128xf32, #tpu.memory_space<vmem>>) target_semaphore(%arg5 : memref<!tpu.dma_semaphore, #tpu.memory_space<semaphore_mem>>)
    }
    %c4_i32_1 = arith.constant 4 : i32
    tpu.wait_dma2 semaphore(%arg5 : memref<!tpu.dma_semaphore, #tpu.memory_space<semaphore_mem>>) src(%arg4 : memref<4x16x128xf32, #tpu.memory_space<vmem>>) dst(%arg4 : memref<4x16x128xf32, #tpu.memory_space<vmem>>)
    %c0 = arith.constant 0 : index
    %c0_2 = arith.constant 0 : index
    %c0_3 = arith.constant 0 : index
    %3 = vector.load %arg4[%c0, %c0_2, %c0_3] : memref<4x16x128xf32, #tpu.memory_space<vmem>>, vector<4x16x128xf32>
    %c0_4 = arith.constant 0 : index
    %c0_5 = arith.constant 0 : index
    %4 = vector.load %arg3[%c0_4, %c0_5] : memref<16x128xf32, #tpu.memory_space<vmem>>, vector<16x128xf32>
    %5 = vector.shape_cast %4 : vector<16x128xf32> to vector<1x16x128xf32>
    %6 = vector.broadcast %5 : vector<1x16x128xf32> to vector<4x16x128xf32>
    %7 = arith.addf %3, %6 : vector<4x16x128xf32>
    %c0_6 = arith.constant 0 : index
    %c0_7 = arith.constant 0 : index
    %c0_8 = arith.constant 0 : index
    %8 = vector.load %arg4[%c0_6, %c0_7, %c0_8] : memref<4x16x128xf32, #tpu.memory_space<vmem>>, vector<4x16x128xf32>
    tpu.vector_store %arg4[%c0_6, %c0_7, %c0_8], %7 {strides = array<i32>} : memref<4x16x128xf32, #tpu.memory_space<vmem>>, vector<4x16x128xf32>,
    return
  }
  func.func @transform_1(%arg0: i32, %arg1: memref<8x16xi32, #tpu.memory_space<smem>>) -> (i32, i32) {
    %c0_i32 = arith.constant 0 : i32
    %c0_i32_0 = arith.constant 0 : i32
    %c0_i32_1 = arith.constant 0 : i32
    return %c0_i32, %c0_i32_0 : i32, i32
  }
  func.func @transform_2(%arg0: i32, %arg1: memref<8x16xi32, #tpu.memory_space<smem>>) -> (i32, i32, i32) {
    %c0_i32 = arith.constant 0 : i32
    %c0_i32_0 = arith.constant 0 : i32
    %c0_i32_1 = arith.constant 0 : i32
    return %arg0, %c0_i32, %c0_i32_0 : i32, i32, i32
  }
}

</mosaic_0001>

<bundles_post_ra>
// kernel: tpu_custom_call.1
= control target key start
LH: loop header
LB: loop body
LE: loop exit
PB: predicated region body
PF: predicated region fallthrough
CT: control target
= control target key end

     0   :  { %s1705_s0 = inlined_call_operand.hbm [shape: s32[8,16], index: 0, kind: input, shape index: {}]   ;;  %s1706_s1 = inlined_call_operand.hbm [shape: f32[512,128], index: 1, kind: input, shape index: {}]   ;;  %s1707_s2 = inlined_call_operand.hbm [shape: f32[16,128], index: 2, kind: input, shape index: {}]   ;;  %s1708_s3 = inlined_call_operand.hbm [shape: f32[8,16,128], index: 3, kind: output, shape index: {}]  }
   0x1   :  { %1717 = sst [smem:[#allocation51_spill]] %s1707_s2  ;;  %s706_s14 = scalar_lea.hbm %s1705_s0, 128 }
   0x2   :  { %p707_p0 = scmp.ne.s32.totalorder %s1705_s0, %s706_s14  ;;  %p710_p1 = scmp.lt.u32.totalorder %s706_s14, %s1705_s0 }
   0x4   :  { %p712_p2 = pnand %p710_p1, %p707_p0 }
   0x6   :  { %715 = shalt.err (!%p712_p2)  }
   0x7   :  { %s1208_s19 = smov [#allocation4]  }
   0x8   :  { %9 = dma.hbm_to_smem %s1705_s0, 128, %s1208_s19, [#allocation3] }
   0x9   :  { %1176 = dma.done.wait [#allocation3], 128 }
   0xa   :  { %1177 = vsyncadd [#allocation3], 4294967168 }
   0xb   :  { %11 = sfence }
   0xc   :  { %12 = vsyncpa [#allocation6], 0 }
   0xd   :  { %13 = vsyncpa [#allocation7], 0 }
   0xe   :  { %15 = vsyncpa [#allocation7 + $0x1], 0  ;;  %s1247_s22 = smov 0   ;;  %s1249_s23 = smov 0  }
   0xf   :  { %s1251_s24 = smov 0   ;;  %s1253_s25 = smov 0  }
  0x10 LB: > { %1718 = sst [smem:[#allocation47_spill]] %s1198_s24  ;;  %s1268_s0 = sadd.s32 4294967295, %s1202_s25   ;;  %s1202_s25 = sphi %s1253_s25, %s1735_s25   ;;  %s1198_s24 = sphi %s1251_s24, %s1737_s24   ;;  %s1194_s23 = sphi %s1249_s23, %s1739_s23   ;;  %s1190_s22 = sphi %s1247_s22, %s1738_s22  }
  0x11   : > { %s594_s26 = sadd.s32 4294967294, %s1202_s25   ;;  %s1272_s27 = sadd.s32 1, %s1202_s25  }
  0x12   : > { %1719 = sst [smem:[#allocation48_spill]] %s1272_s27  ;;  %s49_s28 = sadd.s32 1, %s1198_s24 }
  0x13   : > { %s46_s29 = ssub.s32 %s1202_s25, %s1272_s27  ;;  %p59_p3 = scmp.ne.s32.totalorder %s1198_s24, %s1194_s23 }
  0x14   : > { %p47_p4 = scmp.eq.s32.totalorder %s46_s29, 0  ;;  %p60_p5 = scmp.eq.s32.totalorder %s1268_s0, 1 }
  0x15   : > { %p65_p6 = scmp.ne.s32.totalorder %s1194_s23, %s1190_s22  ;;  %p66_p7 = scmp.eq.s32.totalorder %s594_s26, 1 }
  0x16   : > { %s1283_s30 = scalar_select %p47_p4, %s1198_s24, %s49_s28  }
  0x17   : > { %p1285_p8 = por %p60_p5, %p59_p3  ;;  %p1289_p9 = por %p66_p7, %p65_p6 }
  0x18   : > { %1720 = sst [smem:[#allocation49_spill]] %s1283_s30  ;;  %p595_p10 = scmp.ge.s32.totalorder %s1202_s25, 1 }
  0x19   : > { %s1721_s4 = scalar_select %p1285_p8, 1, 0 }
  0x1a   : > { %s1722_s5 = scalar_select %p1289_p9, 1, 0 }
  0x1b   : > { %p73_p11 = scmp.lt.s32.totalorder %s1202_s25, 3  ;;  %p1709_p12 = scmp.eq.s32.totalorder %s1268_s0, 0 }
  0x1c   : > { %1723 = sst [smem:[#allocation50_spill]] %s1722_s5  ;;  %s1209_s7 = smov [#allocation5]  }
  0x1d   : > { %p1296_p13 = pnand %p595_p10, %p73_p11  ;;  %s85_s8 = sshll.u32 %s1209_s7, 4  ;;  %s86_s8 = int_to_ptr.vmem [resolvable:$true] %s85_s8 }
  0x1e   : > { %s1726_s2 = sld [smem:[#allocation51_spill]] }
  0x1f   : > { %s1724_s6 = scalar_select %p1296_p13, 1, 0 }
  0x20   : > { %p649_p0 = pneg %p1296_p13 }
  0x22   : > { %p1304_p1 = pnand %p1709_p12, %p649_p0 }
  0x24   : > { %s716_s12 = scalar_lea.hbm %s1726_s2, 256  ;;  %p718_p3 = pneg %p1304_p1 }
  0x25   : > { %p717_p2 = scmp.ne.s32.totalorder %s1726_s2, %s716_s12  ;;  %p723_p6 = scmp.lt.u32.totalorder %s716_s12, %s1726_s2 }
  0x27   : > { %p719_p4 = pnand %p718_p3, %p717_p2 }
  0x29   : > { %p720_p5 = pneg %p719_p4 }
  0x2b   : > { %p725_p7 = pnand %p723_p6, %p720_p5 }
  0x2d   : > { %728 = shalt.err (!%p725_p7)
}
  0x2e   : > { %s729_s17 = scalar_lea.vmem %s86_s8, 256  ;;  %p737_p12 = scmp.lt.s32.totalorder %s86_s8, %s86_s8 }
  0x2f   : > { %p730_p10 = scmp.ne.s32.totalorder %s86_s8, %s729_s17  ;;  %p738_p9 = scmp.lt.s32.totalorder %s729_s17, %s729_s17 }
  0x31   : > { %p732_p11 = pnand %p730_p10, %p718_p3  ;;  %p739_p8 = por %p738_p9, %p737_p12 }
  0x33   : > { %p733_p0 = pneg %p732_p11 }
  0x35   : > { %p740_p13 = pnand %p739_p8, %p733_p0 }
  0x37   : > { %743 = shalt.err (!%p740_p13)
}
  0x38   : > { %s1210_s18 = smov 128   ;;  %s1211_s19 = smov 8  }
  0x39   : > { %652 = dma.hbm_to_vmem [thread:$0]  (!%p1304_p1), %s1726_s2, 256, %s86_s8, [#allocation6], %s1210_s18, %s1210_s18, %s1211_s19  }
  0x3a   : > { %p1727_p2 = scmp.ne.s32.totalorder %s1724_s6, 0 }
  0x3b   : > { %p1728_p4 = scmp.eq.s32.totalorder (!%p1727_p2), %s1268_s0, 0 }
  0x3c   : > { %101 = sbr.rel (%p1727_p2) target bundleno = 469 (0x1d5), region = 24 }
  0x43   : > { %1179 = dma.done.wait (%p1728_p4), [#allocation6], 256   ;;  %p1729_p3 = pmov %p1728_p4 }
  0x44   : > { %s1712_s26 = sand.u32 1, %s1194_s23   ;;  %s1336_s9 = smov 0  }
  0x45   : > { %1181 = vsyncadd (%p1729_p3), [#allocation6], 4294967040  ;;  %s599_s29 = sshll.u32 %s1712_s26, 6 }
  0x46   : > { %s1334_s7 = scalar_lea.vmem [#allocation8], %s599_s29 }
  0x47 LB: >> { %s1730_s28 = sshll.u32 %s1268_s0, 2  ;;  %s603_s8 = sshll.u32 %s1206_s9, 4  ;;  %s1206_s9 = sphi %s1336_s9, %s123_s9  }
  0x48   : >> { %s124_s6 = sadd.s32 %s1206_s9, %s1730_s28  ;;  %s1348_s11 = scalar_lea.vmem %s1334_s7, %s603_s8 [#allocation8] }
  0x49   : >> { %s1345_s10 = sshll.u32 %s124_s6, 7  ;;  %s138_s13 = sshll.u32 %s1348_s11, 4  ;;  %s1352_s13 = int_to_ptr.vmem [resolvable:$true] %s138_s13 }
  0x4a   : >> { %s126_s12 = sld [smem:[#allocation4 + %s1345_s10]]  ;;  %s142_s14 = sadd.s32 1, %s1345_s10 }
  0x4b   : >> { %s1355_s15 = sld [smem:[#allocation4 + %s142_s14]]  ;;  %s486_s16 = scalar_lea.vmem %s1348_s11, 1 [#allocation8] }
  0x4c   : >> { %s155_s17 = sshll.u32 %s486_s16, 4  ;;  %s159_s18 = sadd.s32 2, %s1345_s10  ;;  %s1359_s17 = int_to_ptr.vmem [resolvable:$true] %s155_s17 }
  0x4d   : >> { %s1361_s19 = sld [smem:[#allocation4 + %s159_s18]]  ;;  %s491_s20 = scalar_lea.vmem %s1348_s11, 2 [#allocation8] }
  0x4e   : >> { %s176_s21 = sadd.s32 3, %s1345_s10  ;;  %s172_s6 = sshll.u32 %s491_s20, 4  ;;  %s1368_s6 = int_to_ptr.vmem [resolvable:$true] %s172_s6 }
  0x4f   : >> { %s1373_s16 = scalar_lea.hbm %s1706_s1, 8192 }
  0x50   : >> { %s602_s29 = sshll.u32 %s126_s12, 4 }
  0x51   : >> { %s128_s26 = scalar_lea.hbm %s1706_s1, %s602_s29 }
  0x52   : >> { %s744_s2 = scalar_lea.hbm %s128_s26, 16  ;;  %p747_p9 = scmp.lt.u32.totalorder %s128_s26, %s1706_s1 }
  0x53   : >> { %p745_p8 = scmp.ne.s32.totalorder %s128_s26, %s744_s2  ;;  %p748_p12 = scmp.lt.u32.totalorder %s1373_s16, %s744_s2 }
  0x54   : >> { %p750_p1 = scmp.lt.u32.totalorder %s744_s2, %s128_s26 }
  0x55   : >> { %p749_p13 = por %p748_p12, %p747_p9 }
  0x57   : >> { %p751_p5 = por %p750_p1, %p749_p13 }
  0x59   : >> { %p752_p6 = pnand %p751_p5, %p745_p8 }
  0x5b   : >> { %755 = shalt.err (!%p752_p6)  }
  0x5c   : >> { %s756_s28 = scalar_lea.vmem %s1352_s13, 16  ;;  %s1212_s12 = smov [#allocation8]  }
  0x5d   : >> { %p757_p7 = scmp.ne.s32.totalorder %s1352_s13, %s756_s28  ;;  %s758_s30 = sshll.u32 %s1212_s12, 4  ;;  %s1381_s30 = int_to_ptr.vmem [resolvable:$false] %s758_s30 }
  0x5e   : >> { %s1384_s24 = scalar_lea.vmem %s1381_s30, 2048  ;;  %p761_p10 = scmp.lt.s32.totalorder %s1352_s13, %s1381_s30 }
  0x5f   : >> { %p762_p11 = scmp.lt.s32.totalorder %s1384_s24, %s756_s28 }
  0x61   : >> { %p763_p0 = por %p762_p11, %p761_p10 }
  0x63   : >> { %p764_p2 = pnand %p763_p0, %p757_p7 }
  0x65   : >> { %767 = shalt.err (!%p764_p2)  }
  0x66   : >> { %141 = dma.hbm_to_vmem [thread:$0]  %s128_s26, 16, %s1352_s13, [#allocation2] }
  0x67   : >> { %s604_s2 = sshll.u32 %s1355_s15, 4  ;;  %s1391_s20 = sld [smem:[#allocation4 + %s176_s21]] }
  0x68   : >> { %s145_s14 = scalar_lea.hbm %s1706_s1, %s604_s2  ;;  %s606_s18 = sshll.u32 %s1361_s19, 4 }
  0x69   : >> { %s768_s12 = scalar_lea.hbm %s145_s14, 16  ;;  %p771_p3 = scmp.lt.u32.totalorder %s145_s14, %s1706_s1 }
  0x6a   : >> { %p769_p4 = scmp.ne.s32.totalorder %s145_s14, %s768_s12  ;;  %p772_p8 = scmp.lt.u32.totalorder %s1373_s16, %s768_s12 }
  0x6b   : >> { %p774_p12 = scmp.lt.u32.totalorder %s768_s12, %s145_s14 }
  0x6c   : >> { %p773_p9 = por %p772_p8, %p771_p3 }
  0x6e   : >> { %p775_p13 = por %p774_p12, %p773_p9 }
  0x70   : >> { %p776_p1 = pnand %p775_p13, %p769_p4 }
  0x72   : >> { %779 = shalt.err (!%p776_p1)  }
  0x73   : >> { %s780_s26 = scalar_lea.vmem %s1359_s17, 16  ;;  %p785_p6 = scmp.lt.s32.totalorder %s1359_s17, %s1381_s30 }
  0x74   : >> { %p781_p5 = scmp.ne.s32.totalorder %s1359_s17, %s780_s26  ;;  %p786_p7 = scmp.lt.s32.totalorder %s1384_s24, %s780_s26 }
  0x76   : >> { %p787_p10 = por %p786_p7, %p785_p6 }
  0x78   : >> { %p788_p11 = pnand %p787_p10, %p781_p5 }
  0x7a   : >> { %791 = shalt.err (!%p788_p11)  }
  0x7b   : >> { %158 = dma.hbm_to_vmem [thread:$0]  %s145_s14, 16, %s1359_s17, [#allocation2] }
  0x7c   : >> { %s162_s15 = scalar_lea.hbm %s1706_s1, %s606_s18  ;;  %s496_s19 = scalar_lea.vmem %s1348_s11, 3 [#allocation8] }
  0x7d   : >> { %s792_s21 = scalar_lea.hbm %s162_s15, 16  ;;  %p795_p2 = scmp.lt.u32.totalorder %s162_s15, %s1706_s1 }
  0x7e   : >> { %p793_p0 = scmp.ne.s32.totalorder %s162_s15, %s792_s21  ;;  %p796_p4 = scmp.lt.u32.totalorder %s1373_s16, %s792_s21 }
  0x7f   : >> { %p798_p8 = scmp.lt.u32.totalorder %s792_s21, %s162_s15 }
  0x80   : >> { %p797_p3 = por %p796_p4, %p795_p2 }
  0x82   : >> { %p799_p9 = por %p798_p8, %p797_p3 }
  0x84   : >> { %p800_p12 = pnand %p799_p9, %p793_p0 }
  0x86   : >> { %803 = shalt.err (!%p800_p12)  }
  0x87   : >> { %s804_s17 = scalar_lea.vmem %s1368_s6, 16  ;;  %p809_p1 = scmp.lt.s32.totalorder %s1368_s6, %s1381_s30 }
  0x88   : >> { %p805_p13 = scmp.ne.s32.totalorder %s1368_s6, %s804_s17  ;;  %p810_p5 = scmp.lt.s32.totalorder %s1384_s24, %s804_s17 }
  0x8a   : >> { %p811_p6 = por %p810_p5, %p809_p1 }
  0x8c   : >> { %p812_p7 = pnand %p811_p6, %p805_p13 }
  0x8e   : >> { %815 = shalt.err (!%p812_p7)  }
  0x8f   : >> { %175 = dma.hbm_to_vmem [thread:$0]  %s162_s15, 16, %s1368_s6, [#allocation2] }
  0x90   : >> { %s189_s8 = sshll.u32 %s496_s19, 4  ;;  %s193_s14 = sadd.s32 4, %s1345_s10  ;;  %s190_s8 = int_to_ptr.vmem [resolvable:$true] %s189_s8 }
  0x91   : >> { %s608_s18 = sshll.u32 %s1391_s20, 4  ;;  %s1426_s27 = sld [smem:[#allocation4 + %s193_s14]] }
  0x92   : >> { %s179_s26 = scalar_lea.hbm %s1706_s1, %s608_s18 }
  0x93   : >> { %s816_s13 = scalar_lea.hbm %s179_s26, 16  ;;  %p819_p11 = scmp.lt.u32.totalorder %s179_s26, %s1706_s1 }
  0x94   : >> { %p817_p10 = scmp.ne.s32.totalorder %s179_s26, %s816_s13  ;;  %p820_p0 = scmp.lt.u32.totalorder %s1373_s16, %s816_s13 }
  0x95   : >> { %p822_p4 = scmp.lt.u32.totalorder %s816_s13, %s179_s26 }
  0x96   : >> { %p821_p2 = por %p820_p0, %p819_p11 }
  0x98   : >> { %p823_p3 = por %p822_p4, %p821_p2 }
  0x9a   : >> { %p824_p8 = pnand %p823_p3, %p817_p10 }
  0x9c   : >> { %827 = shalt.err (!%p824_p8)  }
  0x9d   : >> { %s828_s6 = scalar_lea.vmem %s190_s8, 16  ;;  %p833_p12 = scmp.lt.s32.totalorder %s190_s8, %s1381_s30 }
  0x9e   : >> { %p829_p9 = scmp.ne.s32.totalorder %s190_s8, %s828_s6  ;;  %p834_p13 = scmp.lt.s32.totalorder %s1384_s24, %s828_s6 }
  0xa0   : >> { %p835_p1 = por %p834_p13, %p833_p12 }
  0xa2   : >> { %p836_p5 = pnand %p835_p1, %p829_p9 }
  0xa4   : >> { %839 = shalt.err (!%p836_p5)  }
  0xa5   : >> { %192 = dma.hbm_to_vmem [thread:$0]  %s179_s26, 16, %s190_s8, [#allocation2] }
  0xa6   : >> { %s501_s20 = scalar_lea.vmem %s1348_s11, 4 [#allocation8]  ;;  %s210_s15 = sadd.s32 5, %s1345_s10 }
  0xa7   : >> { %s206_s19 = sshll.u32 %s501_s20, 4  ;;  %s1436_s29 = sld [smem:[#allocation4 + %s210_s15]]  ;;  %s207_s19 = int_to_ptr.vmem [resolvable:$true] %s206_s19 }
  0xa8   : >> { %s506_s17 = scalar_lea.vmem %s1348_s11, 5 [#allocation8]  ;;  %s227_s18 = sadd.s32 6, %s1345_s10 }
  0xa9   : >> { %s223_s14 = sshll.u32 %s506_s17, 4  ;;  %s610_s12 = sshll.u32 %s1426_s27, 4  ;;  %s1441_s14 = int_to_ptr.vmem [resolvable:$true] %s223_s14 }
  0xaa   : >> { %s196_s26 = scalar_lea.hbm %s1706_s1, %s610_s12  ;;  %s1446_s13 = sld [smem:[#allocation4 + %s227_s18]] }
  0xab   : >> { %s840_s21 = scalar_lea.hbm %s196_s26, 16  ;;  %p843_p7 = scmp.lt.u32.totalorder %s196_s26, %s1706_s1 }
  0xac   : >> { %p841_p6 = scmp.ne.s32.totalorder %s196_s26, %s840_s21  ;;  %p844_p10 = scmp.lt.u32.totalorder %s1373_s16, %s840_s21 }
  0xad   : >> { %p846_p0 = scmp.lt.u32.totalorder %s840_s21, %s196_s26 }
  0xae   : >> { %p845_p11 = por %p844_p10, %p843_p7 }
  0xb0   : >> { %p847_p2 = por %p846_p0, %p845_p11 }
  0xb2   : >> { %p848_p4 = pnand %p847_p2, %p841_p6 }
  0xb4   : >> { %851 = shalt.err (!%p848_p4)  }
  0xb5   : >> { %s852_s27 = scalar_lea.vmem %s207_s19, 16  ;;  %p857_p8 = scmp.lt.s32.totalorder %s207_s19, %s1381_s30 }
  0xb6   : >> { %p853_p3 = scmp.ne.s32.totalorder %s207_s19, %s852_s27  ;;  %p858_p9 = scmp.lt.s32.totalorder %s1384_s24, %s852_s27 }
  0xb8   : >> { %p859_p12 = por %p858_p9, %p857_p8 }
  0xba   : >> { %p860_p13 = pnand %p859_p12, %p853_p3 }
  0xbc   : >> { %863 = shalt.err (!%p860_p13)  }
  0xbd   : >> { %209 = dma.hbm_to_vmem [thread:$0]  %s196_s26, 16, %s207_s19, [#allocation2] }
  0xbe   : >> { %s612_s20 = sshll.u32 %s1436_s29, 4  ;;  %s511_s15 = scalar_lea.vmem %s1348_s11, 6 [#allocation8] }
  0xbf   : >> { %s213_s12 = scalar_lea.hbm %s1706_s1, %s612_s20  ;;  %s240_s28 = sshll.u32 %s511_s15, 4  ;;  %s241_s28 = int_to_ptr.vmem [resolvable:$true] %s240_s28 }
  0xc0   : >> { %s864_s8 = scalar_lea.hbm %s213_s12, 16  ;;  %p867_p5 = scmp.lt.u32.totalorder %s213_s12, %s1706_s1 }
  0xc1   : >> { %p865_p1 = scmp.ne.s32.totalorder %s213_s12, %s864_s8  ;;  %p868_p6 = scmp.lt.u32.totalorder %s1373_s16, %s864_s8 }
  0xc2   : >> { %p870_p10 = scmp.lt.u32.totalorder %s864_s8, %s213_s12 }
  0xc3   : >> { %p869_p7 = por %p868_p6, %p867_p5 }
  0xc5   : >> { %p871_p11 = por %p870_p10, %p869_p7 }
  0xc7   : >> { %p872_p0 = pnand %p871_p11, %p865_p1 }
  0xc9   : >> { %875 = shalt.err (!%p872_p0)  }
  0xca   : >> { %s876_s19 = scalar_lea.vmem %s1441_s14, 16  ;;  %p881_p4 = scmp.lt.s32.totalorder %s1441_s14, %s1381_s30 }
  0xcb   : >> { %p877_p2 = scmp.ne.s32.totalorder %s1441_s14, %s876_s19  ;;  %p882_p3 = scmp.lt.s32.totalorder %s1384_s24, %s876_s19 }
  0xcd   : >> { %p883_p8 = por %p882_p3, %p881_p4 }
  0xcf   : >> { %p884_p9 = pnand %p883_p8, %p877_p2 }
  0xd1   : >> { %887 = shalt.err (!%p884_p9)  }
  0xd2   : >> { %226 = dma.hbm_to_vmem [thread:$0]  %s213_s12, 16, %s1441_s14, [#allocation2] }
  0xd3   : >> { %s244_s29 = sadd.s32 7, %s1345_s10  ;;  %s614_s26 = sshll.u32 %s1446_s13, 4 }
  0xd4   : >> { %s1471_s6 = sld [smem:[#allocation4 + %s244_s29]]  ;;  %s230_s15 = scalar_lea.hbm %s1706_s1, %s614_s26 }
  0xd5   : >> { %s516_s17 = scalar_lea.vmem %s1348_s11, 7 [#allocation8]  ;;  %s888_s18 = scalar_lea.hbm %s230_s15, 16 }
  0xd6   : >> { %p889_p12 = scmp.ne.s32.totalorder %s230_s15, %s888_s18  ;;  %p891_p13 = scmp.lt.u32.totalorder %s230_s15, %s1706_s1 }
  0xd7   : >> { %p892_p1 = scmp.lt.u32.totalorder %s1373_s16, %s888_s18  ;;  %p894_p6 = scmp.lt.u32.totalorder %s888_s18, %s230_s15 }
  0xd9   : >> { %p893_p5 = por %p892_p1, %p891_p13 }
  0xdb   : >> { %p895_p7 = por %p894_p6, %p893_p5 }
  0xdd   : >> { %p896_p10 = pnand %p895_p7, %p889_p12 }
  0xdf   : >> { %899 = shalt.err (!%p896_p10)  }
  0xe0   : >> { %s900_s14 = scalar_lea.vmem %s241_s28, 16  ;;  %p905_p0 = scmp.lt.s32.totalorder %s241_s28, %s1381_s30 }
  0xe1   : >> { %p901_p11 = scmp.ne.s32.totalorder %s241_s28, %s900_s14  ;;  %p906_p2 = scmp.lt.s32.totalorder %s1384_s24, %s900_s14 }
  0xe3   : >> { %p907_p4 = por %p906_p2, %p905_p0 }
  0xe5   : >> { %p908_p3 = pnand %p907_p4, %p901_p11 }
  0xe7   : >> { %911 = shalt.err (!%p908_p3)  }
  0xe8   : >> { %243 = dma.hbm_to_vmem [thread:$0]  %s230_s15, 16, %s241_s28, [#allocation2] }
  0xe9   : >> { %s257_s13 = sshll.u32 %s516_s17, 4  ;;  %s261_s12 = sadd.s32 8, %s1345_s10  ;;  %s258_s13 = int_to_ptr.vmem [resolvable:$true] %s257_s13 }
  0xea   : >> { %s1484_s2 = sld [smem:[#allocation4 + %s261_s12]]  ;;  %s521_s19 = scalar_lea.vmem %s1348_s11, 8 [#allocation8] }
  0xeb   : >> { %s278_s29 = sadd.s32 9, %s1345_s10  ;;  %s616_s26 = sshll.u32 %s1471_s6, 4 }
  0xec   : >> { %s274_s27 = sshll.u32 %s521_s19, 4  ;;  %s247_s8 = scalar_lea.hbm %s1706_s1, %s616_s26  ;;  %s1492_s27 = int_to_ptr.vmem [resolvable:$true] %s274_s27 }
  0xed   : >> { %s912_s28 = scalar_lea.hbm %s247_s8, 16  ;;  %p915_p9 = scmp.lt.u32.totalorder %s247_s8, %s1706_s1 }
  0xee   : >> { %p913_p8 = scmp.ne.s32.totalorder %s247_s8, %s912_s28  ;;  %p916_p12 = scmp.lt.u32.totalorder %s1373_s16, %s912_s28 }
  0xef   : >> { %p918_p1 = scmp.lt.u32.totalorder %s912_s28, %s247_s8 }
  0xf0   : >> { %p917_p13 = por %p916_p12, %p915_p9 }
  0xf2   : >> { %p919_p5 = por %p918_p1, %p917_p13 }
  0xf4   : >> { %p920_p6 = pnand %p919_p5, %p913_p8 }
  0xf6   : >> { %923 = shalt.err (!%p920_p6)  }
  0xf7   : >> { %s924_s6 = scalar_lea.vmem %s258_s13, 16  ;;  %p929_p10 = scmp.lt.s32.totalorder %s258_s13, %s1381_s30 }
  0xf8   : >> { %p925_p7 = scmp.ne.s32.totalorder %s258_s13, %s924_s6  ;;  %p930_p11 = scmp.lt.s32.totalorder %s1384_s24, %s924_s6 }
  0xfa   : >> { %p931_p0 = por %p930_p11, %p929_p10 }
  0xfc   : >> { %p932_p2 = pnand %p931_p0, %p925_p7 }
  0xfe   : >> { %935 = shalt.err (!%p932_p2)  }
  0xff   : >> { %260 = dma.hbm_to_vmem [thread:$0]  %s247_s8, 16, %s258_s13, [#allocation2] }
 0x100   : >> { %s1500_s17 = sld [smem:[#allocation4 + %s278_s29]]  ;;  %s526_s14 = scalar_lea.vmem %s1348_s11, 9 [#allocation8] }
 0x101   : >> { %s618_s12 = sshll.u32 %s1484_s2, 4  ;;  %s291_s19 = sshll.u32 %s526_s14, 4  ;;  %s1507_s19 = int_to_ptr.vmem [resolvable:$true] %s291_s19 }
 0x102   : >> { %s264_s18 = scalar_lea.hbm %s1706_s1, %s618_s12 }
 0x103   : >> { %s936_s28 = scalar_lea.hbm %s264_s18, 16  ;;  %p939_p3 = scmp.lt.u32.totalorder %s264_s18, %s1706_s1 }
 0x104   : >> { %p937_p4 = scmp.ne.s32.totalorder %s264_s18, %s936_s28  ;;  %p940_p8 = scmp.lt.u32.totalorder %s1373_s16, %s936_s28 }
 0x105   : >> { %p942_p12 = scmp.lt.u32.totalorder %s936_s28, %s264_s18 }
 0x106   : >> { %p941_p9 = por %p940_p8, %p939_p3 }
 0x108   : >> { %p943_p13 = por %p942_p12, %p941_p9 }
 0x10a   : >> { %p944_p1 = pnand %p943_p13, %p937_p4 }
 0x10c   : >> { %947 = shalt.err (!%p944_p1)  }
 0x10d   : >> { %s948_s13 = scalar_lea.vmem %s1492_s27, 16  ;;  %p953_p6 = scmp.lt.s32.totalorder %s1492_s27, %s1381_s30 }
 0x10e   : >> { %p949_p5 = scmp.ne.s32.totalorder %s1492_s27, %s948_s13  ;;  %p954_p7 = scmp.lt.s32.totalorder %s1384_s24, %s948_s13 }
 0x110   : >> { %p955_p10 = por %p954_p7, %p953_p6 }
 0x112   : >> { %p956_p11 = pnand %p955_p10, %p949_p5 }
 0x114   : >> { %959 = shalt.err (!%p956_p11)  }
 0x115   : >> { %277 = dma.hbm_to_vmem [thread:$0]  %s264_s18, 16, %s1492_s27, [#allocation2] }
 0x116   : >> { %s295_s2 = sadd.s32 10, %s1345_s10  ;;  %s531_s29 = scalar_lea.vmem %s1348_s11, 10 [#allocation8] }
 0x117   : >> { %s1521_s8 = sld [smem:[#allocation4 + %s295_s2]]  ;;  %s308_s6 = sshll.u32 %s531_s29, 4  ;;  %s1524_s6 = int_to_ptr.vmem [resolvable:$true] %s308_s6 }
 0x118   : >> { %s620_s14 = sshll.u32 %s1500_s17, 4  ;;  %s312_s28 = sadd.s32 11, %s1345_s10 }
 0x119   : >> { %s281_s20 = scalar_lea.hbm %s1706_s1, %s620_s14 }
 0x11a   : >> { %s960_s15 = scalar_lea.hbm %s281_s20, 16  ;;  %p963_p2 = scmp.lt.u32.totalorder %s281_s20, %s1706_s1 }
 0x11b   : >> { %p961_p0 = scmp.ne.s32.totalorder %s281_s20, %s960_s15  ;;  %p964_p4 = scmp.lt.u32.totalorder %s1373_s16, %s960_s15 }
 0x11c   : >> { %p966_p8 = scmp.lt.u32.totalorder %s960_s15, %s281_s20 }
 0x11d   : >> { %p965_p3 = por %p964_p4, %p963_p2 }
 0x11f   : >> { %p967_p9 = por %p966_p8, %p965_p3 }
 0x121   : >> { %p968_p12 = pnand %p967_p9, %p961_p0 }
 0x123   : >> { %971 = shalt.err (!%p968_p12)  }
 0x124   : >> { %s972_s27 = scalar_lea.vmem %s1507_s19, 16  ;;  %p977_p1 = scmp.lt.s32.totalorder %s1507_s19, %s1381_s30 }
 0x125   : >> { %p973_p13 = scmp.ne.s32.totalorder %s1507_s19, %s972_s27  ;;  %p978_p5 = scmp.lt.s32.totalorder %s1384_s24, %s972_s27 }
 0x127   : >> { %p979_p6 = por %p978_p5, %p977_p1 }
 0x129   : >> { %p980_p7 = pnand %p979_p6, %p973_p13 }
 0x12b   : >> { %983 = shalt.err (!%p980_p7)  }
 0x12c   : >> { %294 = dma.hbm_to_vmem [thread:$0]  %s281_s20, 16, %s1507_s19, [#allocation2] }
 0x12d   : >> { %s1540_s17 = sld [smem:[#allocation4 + %s312_s28]]  ;;  %s536_s18 = scalar_lea.vmem %s1348_s11, 11 [#allocation8] }
 0x12e   : >> { %s325_s2 = sshll.u32 %s536_s18, 4  ;;  %s329_s29 = sadd.s32 12, %s1345_s10  ;;  %s1545_s2 = int_to_ptr.vmem [resolvable:$true] %s325_s2 }
 0x12f   : >> { %s622_s14 = sshll.u32 %s1521_s8, 4  ;;  %s1550_s21 = sld [smem:[#allocation4 + %s329_s29]] }
 0x130   : >> { %s298_s15 = scalar_lea.hbm %s1706_s1, %s622_s14 }
 0x131   : >> { %s984_s13 = scalar_lea.hbm %s298_s15, 16  ;;  %p987_p11 = scmp.lt.u32.totalorder %s298_s15, %s1706_s1 }
 0x132   : >> { %p985_p10 = scmp.ne.s32.totalorder %s298_s15, %s984_s13  ;;  %p988_p0 = scmp.lt.u32.totalorder %s1373_s16, %s984_s13 }
 0x133   : >> { %p990_p4 = scmp.lt.u32.totalorder %s984_s13, %s298_s15 }
 0x134   : >> { %p989_p2 = por %p988_p0, %p987_p11 }
 0x136   : >> { %p991_p3 = por %p990_p4, %p989_p2 }
 0x138   : >> { %p992_p8 = pnand %p991_p3, %p985_p10 }
 0x13a   : >> { %995 = shalt.err (!%p992_p8)  }
 0x13b   : >> { %s996_s19 = scalar_lea.vmem %s1524_s6, 16  ;;  %p1001_p12 = scmp.lt.s32.totalorder %s1524_s6, %s1381_s30 }
 0x13c   : >> { %p997_p9 = scmp.ne.s32.totalorder %s1524_s6, %s996_s19  ;;  %p1002_p13 = scmp.lt.s32.totalorder %s1384_s24, %s996_s19 }
 0x13e   : >> { %p1003_p1 = por %p1002_p13, %p1001_p12 }
 0x140   : >> { %p1004_p5 = pnand %p1003_p1, %p997_p9 }
 0x142   : >> { %1007 = shalt.err (!%p1004_p5)  }
 0x143   : >> { %311 = dma.hbm_to_vmem [thread:$0]  %s298_s15, 16, %s1524_s6, [#allocation2] }
 0x144   : >> { %s541_s5 = scalar_lea.vmem %s1348_s11, 12 [#allocation8]  ;;  %s346_s8 = sadd.s32 13, %s1345_s10 }
 0x145   : >> { %s624_s20 = sshll.u32 %s1540_s17, 4  ;;  %s342_s28 = sshll.u32 %s541_s5, 4  ;;  %s1568_s28 = int_to_ptr.vmem [resolvable:$true] %s342_s28 }
 0x146   : >> { %s315_s14 = scalar_lea.hbm %s1706_s1, %s624_s20 }
 0x147   : >> { %s1008_s12 = scalar_lea.hbm %s315_s14, 16  ;;  %p1011_p7 = scmp.lt.u32.totalorder %s315_s14, %s1706_s1 }
 0x148   : >> { %p1009_p6 = scmp.ne.s32.totalorder %s315_s14, %s1008_s12  ;;  %p1012_p10 = scmp.lt.u32.totalorder %s1373_s16, %s1008_s12 }
 0x149   : >> { %p1014_p0 = scmp.lt.u32.totalorder %s1008_s12, %s315_s14 }
 0x14a   : >> { %p1013_p11 = por %p1012_p10, %p1011_p7 }
 0x14c   : >> { %p1015_p2 = por %p1014_p0, %p1013_p11 }
 0x14e   : >> { %p1016_p4 = pnand %p1015_p2, %p1009_p6 }
 0x150   : >> { %1019 = shalt.err (!%p1016_p4)  }
 0x151   : >> { %s1020_s6 = scalar_lea.vmem %s1545_s2, 16  ;;  %p1025_p8 = scmp.lt.s32.totalorder %s1545_s2, %s1381_s30 }
 0x152   : >> { %p1021_p3 = scmp.ne.s32.totalorder %s1545_s2, %s1020_s6  ;;  %p1026_p9 = scmp.lt.s32.totalorder %s1384_s24, %s1020_s6 }
 0x154   : >> { %p1027_p12 = por %p1026_p9, %p1025_p8 }
 0x156   : >> { %p1028_p13 = pnand %p1027_p12, %p1021_p3 }
 0x158   : >> { %1031 = shalt.err (!%p1028_p13)  }
 0x159   : >> { %328 = dma.hbm_to_vmem [thread:$0]  %s315_s14, 16, %s1545_s2, [#allocation2] }
 0x15a   : >> { %s626_s17 = sshll.u32 %s1550_s21, 4  ;;  %s1581_s15 = sld [smem:[#allocation4 + %s346_s8]] }
 0x15b   : >> { %s332_s5 = scalar_lea.hbm %s1706_s1, %s626_s17  ;;  %s546_s20 = scalar_lea.vmem %s1348_s11, 13 [#allocation8] }
 0x15c   : >> { %s1032_s18 = scalar_lea.hbm %s332_s5, 16  ;;  %p1035_p5 = scmp.lt.u32.totalorder %s332_s5, %s1706_s1 }
 0x15d   : >> { %p1033_p1 = scmp.ne.s32.totalorder %s332_s5, %s1032_s18  ;;  %p1036_p6 = scmp.lt.u32.totalorder %s1373_s16, %s1032_s18 }
 0x15e   : >> { %p1038_p10 = scmp.lt.u32.totalorder %s1032_s18, %s332_s5 }
 0x15f   : >> { %p1037_p7 = por %p1036_p6, %p1035_p5 }
 0x161   : >> { %p1039_p11 = por %p1038_p10, %p1037_p7 }
 0x163   : >> { %p1040_p0 = pnand %p1039_p11, %p1033_p1 }
 0x165   : >> { %1043 = shalt.err (!%p1040_p0)  }
 0x166   : >> { %s1044_s2 = scalar_lea.vmem %s1568_s28, 16  ;;  %p1049_p4 = scmp.lt.s32.totalorder %s1568_s28, %s1381_s30 }
 0x167   : >> { %p1045_p2 = scmp.ne.s32.totalorder %s1568_s28, %s1044_s2  ;;  %p1050_p3 = scmp.lt.s32.totalorder %s1384_s24, %s1044_s2 }
 0x169   : >> { %p1051_p8 = por %p1050_p3, %p1049_p4 }
 0x16b   : >> { %p1052_p9 = pnand %p1051_p8, %p1045_p2 }
 0x16d   : >> { %1055 = shalt.err (!%p1052_p9)  }
 0x16e   : >> { %345 = dma.hbm_to_vmem [thread:$0]  %s332_s5, 16, %s1568_s28, [#allocation2] }
 0x16f   : >> { %s359_s21 = sshll.u32 %s546_s20, 4  ;;  %s363_s8 = sadd.s32 14, %s1345_s10  ;;  %s360_s21 = int_to_ptr.vmem [resolvable:$true] %s359_s21 }
 0x170   : >> { %s364_s14 = sld [smem:[#allocation4 + %s363_s8]]  ;;  %s551_s26 = scalar_lea.vmem %s1348_s11, 14 [#allocation8] }
 0x171   : >> { %s380_s13 = sadd.s32 15, %s1345_s10  ;;  %s628_s6 = sshll.u32 %s1581_s15, 4 }
 0x172   : >> { %s376_s17 = sshll.u32 %s551_s26, 4  ;;  %s349_s18 = scalar_lea.hbm %s1706_s1, %s628_s6  ;;  %s1604_s17 = int_to_ptr.vmem [resolvable:$true] %s376_s17 }
 0x173   : >> { %s1056_s29 = scalar_lea.hbm %s349_s18, 16  ;;  %p1059_p13 = scmp.lt.u32.totalorder %s349_s18, %s1706_s1 }
 0x174   : >> { %p1057_p12 = scmp.ne.s32.totalorder %s349_s18, %s1056_s29  ;;  %p1060_p1 = scmp.lt.u32.totalorder %s1373_s16, %s1056_s29 }
 0x175   : >> { %p1062_p6 = scmp.lt.u32.totalorder %s1056_s29, %s349_s18 }
 0x176   : >> { %p1061_p5 = por %p1060_p1, %p1059_p13 }
 0x178   : >> { %p1063_p7 = por %p1062_p6, %p1061_p5 }
 0x17a   : >> { %p1064_p10 = pnand %p1063_p7, %p1057_p12 }
 0x17c   : >> { %1067 = shalt.err (!%p1064_p10)  }
 0x17d   : >> { %s1068_s10 = scalar_lea.vmem %s360_s21, 16  ;;  %p1073_p0 = scmp.lt.s32.totalorder %s360_s21, %s1381_s30 }
 0x17e   : >> { %p1069_p11 = scmp.ne.s32.totalorder %s360_s21, %s1068_s10  ;;  %p1074_p2 = scmp.lt.s32.totalorder %s1384_s24, %s1068_s10 }
 0x180   : >> { %p1075_p4 = por %p1074_p2, %p1073_p0 }
 0x182   : >> { %p1076_p3 = pnand %p1075_p4, %p1069_p11 }
 0x184   : >> { %1079 = shalt.err (!%p1076_p3)  }
 0x185   : >> { %362 = dma.hbm_to_vmem [thread:$0]  %s349_s18, 16, %s360_s21, [#allocation2] }
 0x186   : >> { %s381_s28 = sld [smem:[#allocation4 + %s380_s13]]  ;;  %s556_s15 = scalar_lea.vmem %s1348_s11, 15 [#allocation8] }
 0x187   : >> { %s630_s5 = sshll.u32 %s364_s14, 4  ;;  %s393_s6 = sshll.u32 %s556_s15, 4  ;;  %s394_s6 = int_to_ptr.vmem [resolvable:$true] %s393_s6 }
 0x188   : >> { %s366_s26 = scalar_lea.hbm %s1706_s1, %s630_s5 }
 0x189   : >> { %s1080_s27 = scalar_lea.hbm %s366_s26, 16  ;;  %p1083_p9 = scmp.lt.u32.totalorder %s366_s26, %s1706_s1 }
 0x18a   : >> { %p1081_p8 = scmp.ne.s32.totalorder %s366_s26, %s1080_s27  ;;  %p1084_p12 = scmp.lt.u32.totalorder %s1373_s16, %s1080_s27 }
 0x18b   : >> { %p1086_p1 = scmp.lt.u32.totalorder %s1080_s27, %s366_s26 }
 0x18c   : >> { %p1085_p13 = por %p1084_p12, %p1083_p9 }
 0x18e   : >> { %p1087_p5 = por %p1086_p1, %p1085_p13 }
 0x190   : >> { %p1088_p6 = pnand %p1087_p5, %p1081_p8 }
 0x192   : >> { %1091 = shalt.err (!%p1088_p6)  }
 0x193   : >> { %s1092_s11 = scalar_lea.vmem %s1604_s17, 16  ;;  %p1097_p10 = scmp.lt.s32.totalorder %s1604_s17, %s1381_s30 }
 0x194   : >> { %p1093_p7 = scmp.ne.s32.totalorder %s1604_s17, %s1092_s11  ;;  %p1098_p11 = scmp.lt.s32.totalorder %s1384_s24, %s1092_s11 }
 0x196   : >> { %p1099_p0 = por %p1098_p11, %p1097_p10 }
 0x198   : >> { %p1100_p2 = pnand %p1099_p0, %p1093_p7 }
 0x19a   : >> { %1103 = shalt.err (!%p1100_p2)  }
 0x19b   : >> { %379 = dma.hbm_to_vmem [thread:$0]  %s366_s26, 16, %s1604_s17, [#allocation2] }
 0x19c   : >> { %s632_s21 = sshll.u32 %s381_s28, 4 }
 0x19d   : >> { %s383_s18 = scalar_lea.hbm %s1706_s1, %s632_s21 }
 0x19e   : >> { %s1104_s12 = scalar_lea.hbm %s383_s18, 16  ;;  %p1107_p3 = scmp.lt.u32.totalorder %s383_s18, %s1706_s1 }
 0x19f   : >> { %p1105_p4 = scmp.ne.s32.totalorder %s383_s18, %s1104_s12  ;;  %p1108_p8 = scmp.lt.u32.totalorder %s1373_s16, %s1104_s12 }
 0x1a0   : >> { %p1110_p12 = scmp.lt.u32.totalorder %s1104_s12, %s383_s18 }
 0x1a1   : >> { %p1109_p9 = por %p1108_p8, %p1107_p3 }
 0x1a3   : >> { %p1111_p13 = por %p1110_p12, %p1109_p9 }
 0x1a5   : >> { %p1112_p1 = pnand %p1111_p13, %p1105_p4 }
 0x1a7   : >> { %1115 = shalt.err (!%p1112_p1)  }
 0x1a8   : >> { %s1116_s15 = scalar_lea.vmem %s394_s6, 16  ;;  %p1121_p6 = scmp.lt.s32.totalorder %s394_s6, %s1381_s30 }
 0x1a9   : >> { %p1117_p5 = scmp.ne.s32.totalorder %s394_s6, %s1116_s15  ;;  %p1122_p7 = scmp.lt.s32.totalorder %s1384_s24, %s1116_s15 }
 0x1ab   : >> { %p1123_p10 = por %p1122_p7, %p1121_p6 }
 0x1ad   : >> { %p1124_p11 = pnand %p1123_p10, %p1117_p5 }
 0x1af   : >> { %1127 = shalt.err (!%p1124_p11)  }
 0x1b0   : >> { %396 = dma.hbm_to_vmem [thread:$0]  %s383_s18, 16, %s394_s6, [#allocation2] }
 0x1b1   : >> { %s123_s9 = sadd.s32 1, %s1206_s9  }
 0x1b2   : >> { %p120_p0 = scmp.ge.s32.totalorder %s123_s9, 4  }
 0x1b4   : > { %122 = sbr.rel (!%p120_p0) target bundleno = 71 (0x47), region = 164 }
 0x1bb   : > { %1182 = dma.done.wait [#allocation2], 1024 }
 0x1bc   : > { %1183 = vsyncadd [#allocation2], 4294966272  ;;  %v401_v0 = vld [vmem:[%s1334_s7] sm:$0xff]  ;;  %v409_v1 = vld [vmem:[#allocation5] sm:$0xff]  ;;  %s642_s16 = sshll.u32 %s1268_s0, 10  ;;  %s442_s17 = sshll.u32 %s1334_s7, 4  ;;  %s1654_s17 = int_to_ptr.vmem [resolvable:$true] %s442_s17 }
 0x1bd   : > { %v402_v2 = vld [vmem:[%s1334_s7 + $0x8] sm:$0xff]  ;;  %v411_v3 = vadd.f32 %v409_v1, %v401_v0  ;;  %v410_v4 = vld [vmem:[#allocation5 + $0x8] sm:$0xff]  ;;  %v403_v5 = vld [vmem:[%s1334_s7 + $0x10] sm:$0xff]  ;;  %s1652_s28 = scalar_lea.hbm %s1708_s3, %s642_s16  ;;  %s1731_s5 = sand.u32 1, %s1194_s23  }
 0x1be   : > { %v404_v6 = vld [vmem:[%s1334_s7 + $0x18] sm:$0xff]  ;;  %v412_v7 = vadd.f32 %v410_v4, %v402_v2  ;;  %v413_v8 = vadd.f32 %v409_v1, %v403_v5  ;;  %v405_v10 = vld [vmem:[%s1334_s7 + $0x20] sm:$0xff]  ;;  %v406_v11 = vld [vmem:[%s1334_s7 + $0x28] sm:$0xff]  ;;  %s428_s20 = scalar_lea.sflag [#allocation7], %s1731_s5  ;;  %s1128_s8 = scalar_lea.vmem %s1654_s17, 1024 }
 0x1bf   : > { %v414_v9 = vadd.f32 %v410_v4, %v404_v6  ;;  %v407_v12 = vld [vmem:[%s1334_s7 + $0x30] sm:$0xff]  ;;  %419 = vst [vmem:[%s1334_s7] sm:$0xff] %v411_v3  ;;  %v415_v13 = vadd.f32 %v409_v1, %v405_v10  ;;  %v416_v14 = vadd.f32 %v410_v4, %v406_v11  ;;  %v408_v16 = vld [vmem:[%s1334_s7 + $0x38] sm:$0xff]  ;;  %p1129_p2 = scmp.ne.s32.totalorder %s1654_s17, %s1128_s8  ;;  %p1732_p4 = scmp.ne.s32.totalorder %s1721_s4, 0 }
 0x1c0   : > { %v417_v15 = vadd.f32 %v409_v1, %v407_v12  ;;  %420 = vst [vmem:[%s1334_s7 + $0x8] sm:$0xff] %v412_v7  ;;  %421 = vst [vmem:[%s1334_s7 + $0x10] sm:$0xff] %v413_v8  ;;  %v418_v17 = vadd.f32 %v410_v4, %v408_v16  ;;  %p1135_p9 = scmp.lt.s32.totalorder %s1654_s17, %s1381_s30  ;;  %p1136_p12 = scmp.lt.s32.totalorder %s1384_s24, %s1128_s8 }
 0x1c1   : > { %422 = vst [vmem:[%s1334_s7 + $0x18] sm:$0xff] %v414_v9  ;;  %423 = vst [vmem:[%s1334_s7 + $0x20] sm:$0xff] %v415_v13  ;;  %p1130_p3 = pnand %p1129_p2, %p1732_p4 }
 0x1c2   : > { %424 = vst [vmem:[%s1334_s7 + $0x28] sm:$0xff] %v416_v14  ;;  %425 = vst [vmem:[%s1334_s7 + $0x30] sm:$0xff] %v417_v15  ;;  %p1137_p13 = por %p1136_p12, %p1135_p9 }
 0x1c3   : > { %426 = vst [vmem:[%s1334_s7 + $0x38] sm:$0xff] %v418_v17  ;;  %p1131_p8 = pneg %p1130_p3 }
 0x1c5   : > { %p1138_p1 = pnand %p1137_p13, %p1131_p8 }
 0x1c7   : > { %1141 = shalt.err (!%p1138_p1)
}
 0x1c8   : > { %s1142_s26 = scalar_lea.hbm %s1652_s28, 1024  ;;  %s1146_s27 = scalar_lea.hbm %s1708_s3, 2048 }
 0x1c9   : > { %p1143_p5 = scmp.ne.s32.totalorder %s1652_s28, %s1142_s26  ;;  %p1147_p10 = scmp.lt.u32.totalorder %s1652_s28, %s1708_s3 }
 0x1ca   : > { %p1148_p11 = scmp.lt.u32.totalorder %s1146_s27, %s1142_s26  ;;  %p1150_p2 = scmp.lt.u32.totalorder %s1142_s26, %s1652_s28 }
 0x1cb   : > { %p1144_p6 = pnand %p1143_p5, %p1732_p4 }
 0x1cc   : > { %p1149_p0 = por %p1148_p11, %p1147_p10 }
 0x1cd   : > { %p1145_p7 = pneg %p1144_p6 }
 0x1ce   : > { %p1151_p3 = por %p1150_p2, %p1149_p0 }
 0x1d0   : > { %p1152_p8 = pnand %p1151_p3, %p1145_p7 }
 0x1d2   : > { %1155 = shalt.err (!%p1152_p8)
}
 0x1d3   : > { %s1213_s24 = smov 128   ;;  %s1214_s29 = smov 8  }
 0x1d4   : > { %647 = dma.vmem_to_hbm [thread:$0]  (%p1732_p4), %s1654_s17, 1024, %s1652_s28, %s428_s20, %s1213_s24, %s1213_s24, %s1214_s29  }
 0x1d5 PF: > { %s1733_s11 = sld [smem:[#allocation50_spill]]  ;;  %p659_p9 = scmp.ge.s32.totalorder %s1202_s25, 2 }
 0x1d6   : > { %s457_s21 = sand.u32 1, %s1190_s22  }
 0x1d7   : > { %s458_s14 = scalar_lea.sflag [#allocation7], %s457_s21 }
 0x1db   : > { %p1734_p12 = scmp.ne.s32.totalorder %s1733_s11, 0 }
 0x1dd   : > { %p654_p13 = pnand %p659_p9, %p1734_p12 }
 0x1df   : > { %1185 = dma.done.wait (!%p654_p13), %s458_s14, 1024  }
 0x1e0   : > { %1187 = vsyncadd (!%p654_p13), %s458_s14, 4294966272  ;;  %s1735_s25 = sld [smem:[#allocation48_spill]]  ;;  %s1736_s13 = sld [smem:[#allocation47_spill]] }
 0x1e1   : > { %s1737_s24 = sld [smem:[#allocation49_spill]]  ;;  %s1738_s22 = smov %s1194_s23 }
 0x1e6   : > { %p18_p1 = scmp.ge.s32.totalorder %s1735_s25, 4   ;;  %s1739_s23 = smov %s1736_s13 }
 0x1e8   :  { %20 = sbr.rel (!%p18_p1) target bundleno = 16 (0x10), region = 175 }
 0x1ef   :  { %463 = vsyncpa [#allocation6], 1 }
 0x1f0   :  { %465 = vsyncpa [#allocation6 + $0x1], 1 }
 0x1f1   :  { %466 = vsyncpa [#allocation7], 1 }
 0x1f2   :  { %468 = vsyncpa [#allocation7 + $0x1], 1 }
 0x1f3   :  { %469 = vsyncmov [#allocation2] }
 0x1f6   :  { %s470_s4 = vpop.sfrf %469 }
 0x1f7   :  { %p640_p4 = scmp.ne.s32.totalorder %s470_s4, 0 }
 0x1f9   :  { %474 = shalt.err (%p640_p4)  }

</bundles_post_ra>
